<compile_context>
chip_gen: v6e
topology: v6e:2x2x1
jax: 0.10.0
libtpu: 0.0.40
codegen_flags: <defaults>
</compile_context>

<pallas_src>
import functools

import jax
import jax.numpy as jnp
from jax.experimental import pallas as pl
from jax.experimental.pallas import tpu as pltpu

EPS = 1e-12
TEMPERATURE = 0.67
INV_TEMP = 1.0 / TEMPERATURE
LOG_STD_LOW, LOG_STD_HIGH = -5.0, 0.0

LANE = 128
SUBLANE = 8


def _round_up(x, m):
    return (x + m - 1) // m * m


# --------------------------------------------------------------------------
# Parameter packing: one (8,128)-tiled f32 slab + static layout table.
# --------------------------------------------------------------------------
def pack_params(param_dict):
    """Pack a dict of 2D f32 arrays into a single [rows, lane_w] slab.

    Returns (slab, layout) where layout[name] = (row_offset, (rows, cols))
    with all offsets static Python ints (zero-cost slices inside the kernel).
    """
    lane_w = max(_round_up(a.shape[1], LANE) for a in param_dict.values())
    blocks, layout, row = [], {}, 0
    for name, arr in param_dict.items():
        r, c = arr.shape
        rp = _round_up(r, SUBLANE)
        block = jnp.zeros((rp, lane_w), jnp.float32).at[:r, :c].set(
            arr.astype(jnp.float32))
        blocks.append(block)
        layout[name] = (row, (r, c))
        row += rp
    return jnp.concatenate(blocks, axis=0), layout


# --------------------------------------------------------------------------
# Kernel
# --------------------------------------------------------------------------
def _gma_kernel(max_action, layout, state_ref, u_ref, eps_ref, slab_ref, out_ref):
    def wslice(name):
        r0, (r, c) = layout[name]
        return slab_ref[r0:r0 + r, :c]          # static view, zero-cost

    s = state_ref[...]
    A = eps_ref.shape[1]

    # ---- mixture weight network: relu(l1) -> relu(l2) -> l3_w -> softmax ----
    h = jnp.maximum(
        jnp.dot(s, wslice("w1"), preferred_element_type=jnp.float32) + wslice("b1"), 0.0)
    h = jnp.maximum(
        jnp.dot(h, wslice("w2"), preferred_element_type=jnp.float32) + wslice("b2"), 0.0)
    logits = jnp.dot(h, wslice("w3"), preferred_element_type=jnp.float32) + wslice("b3")

    m = jnp.max(logits, axis=1, keepdims=True)
    e = jnp.exp(logits - m)
    alpha = e * pl.reciprocal(jnp.sum(e, axis=1, keepdims=True), approx=False)

    # ---- gumbel-softmax sample (soft y) ----
    u = u_ref[...]
    gumbel = -jnp.log(-jnp.log(u + EPS) + EPS)
    glogit = (jnp.log(alpha + EPS) + gumbel) * INV_TEMP
    gm = jnp.max(glogit, axis=1, keepdims=True)
    ge = jnp.exp(glogit - gm)
    y = ge * pl.reciprocal(jnp.sum(ge, axis=1, keepdims=True), approx=False)

    # ---- hard one-hot of argmax(alpha) (first index on ties), straight-through ----
    K = alpha.shape[1]
    amax = jnp.max(alpha, axis=1, keepdims=True)
    iota = jax.lax.broadcasted_iota(jnp.int32, alpha.shape, 1)
    masked = jnp.where(alpha == amax, iota, K)
    first_idx = jnp.min(masked, axis=1, keepdims=True)
    one_hot = (iota == first_idx).astype(alpha.dtype)
    z_disc = (one_hot - y) + y
    # TODO(synk): straight-through .detach() gradient semantics are not
    # representable in a forward-only kernel; forward value matches exactly.

    # ---- component LatentGaussianActor forward ----
    z = jnp.maximum(
        jnp.dot(z_disc, wslice("wlat"), preferred_element_type=jnp.float32)
        + wslice("blat"), 0.0)
    sz = jnp.concatenate([s, z], axis=1)                      # cat([state, z], 1)
    a = jnp.maximum(
        jnp.dot(sz, wslice("wc1"), preferred_element_type=jnp.float32)
        + wslice("bc1"), 0.0)
    a = jnp.maximum(
        jnp.dot(a, wslice("wc2"), preferred_element_type=jnp.float32)
        + wslice("bc2"), 0.0)

    # fused mu / log_std head: one matmul, then lane-slice
    ml = jnp.dot(a, wslice("wmuls"), preferred_element_type=jnp.float32) + wslice("bmuls")
    mu = max_action * jnp.tanh(ml[:, :A])
    log_std = max_action * jnp.tanh(ml[:, A:])
    # soft_clamp to (-5, 0)
    log_std = LOG_STD_LOW + 0.5 * (LOG_STD_HIGH - LOG_STD_LOW) * (jnp.tanh(log_std) + 1.0)
    act = mu + jnp.exp(log_std) * eps_ref[...]                # Normal(mu, std).rsample()

    # ---- single lane-dense packed output ----
    packed = jnp.concatenate([mu, log_std, act], axis=1)      # [B, 3A]
    pad = out_ref.shape[1] - packed.shape[1]
    if pad:
        packed = jnp.concatenate(
            [packed, jnp.zeros((packed.shape[0], pad), packed.dtype)], axis=1)
    out_ref[...] = packed


# --------------------------------------------------------------------------
# Wrapper
# --------------------------------------------------------------------------
def gaussian_mixture_actor_forward(state, u, eps, slab, layout, max_action):
    B, state_dim = state.shape
    K = u.shape[1]
    A = eps.shape[1]
    OUT_W = _round_up(3 * A, LANE)                 # lane-dense packed output width

    # batch tiling: weights stay resident, batch axis is the parallel grid
    TILE_B = 256 if B >= 256 else _round_up(B, SUBLANE)
    Bp = _round_up(B, TILE_B)
    if Bp != B:
        pad = Bp - B
        state = jnp.pad(state, ((0, pad), (0, 0)))
        u = jnp.pad(u, ((0, pad), (0, 0)), constant_values=0.5)
        eps = jnp.pad(eps, ((0, pad), (0, 0)))

    out = pl.pallas_call(
        functools.partial(_gma_kernel, max_action, layout),
        out_shape=jax.ShapeDtypeStruct((Bp, OUT_W), jnp.float32),
        grid=(Bp // TILE_B,),
        in_specs=[
            pl.BlockSpec((TILE_B, state_dim), lambda i: (i, 0)),
            pl.BlockSpec((TILE_B, K), lambda i: (i, 0)),
            pl.BlockSpec((TILE_B, A), lambda i: (i, 0)),
            pl.BlockSpec(slab.shape, lambda i: (0, 0)),        # resident weight slab
        ],
        out_specs=pl.BlockSpec((TILE_B, OUT_W), lambda i: (i, 0)),
        compiler_params=pltpu.CompilerParams(
            dimension_semantics=("parallel",),
            vmem_limit_bytes=32 * 1024 * 1024,
        ),
    )(state, u, eps, slab)

    out = out[:B]
    return out[:, :A], out[:, A:2 * A], out[:, 2 * A:3 * A]


# --------------------------------------------------------------------------
# Parameter construction (PyTorch-Linear-like init), fusion, reference
# --------------------------------------------------------------------------
def init_params(key, state_dim, action_dim, hidden, component_num):
    def lin(k, fan_in, fan_out):
        kw, kb = jax.random.split(k)
        bound = 1.0 / jnp.sqrt(jnp.float32(fan_in))
        w = jax.random.uniform(kw, (fan_in, fan_out), jnp.float32, -bound, bound)
        b = jax.random.uniform(kb, (1, fan_out), jnp.float32, -bound, bound)
        return w, b

    keys = jax.random.split(key, 9)
    w1, b1 = lin(keys[0], state_dim, hidden[0])            # GaussianMixtureActor.l1
    w2, b2 = lin(keys[1], hidden[0], hidden[1])            # .l2
    w3, b3 = lin(keys[2], hidden[1], component_num)        # .l3_w
    wlat, blat = lin(keys[3], component_num, state_dim)    # component.l1_latent
    wc1, bc1 = lin(keys[4], 2 * state_dim, hidden[0])      # component.l1 (on cat[state,z])
    wc2, bc2 = lin(keys[5], hidden[0], hidden[1])          # component.l2
    wmu, bmu = lin(keys[6], hidden[1], action_dim)         # component.l3_mu
    wls, bls = lin(keys[7], hidden[1], action_dim)         # component.l3_log_std
    return (w1, b1, w2, b2, w3, b3, wlat, blat, wc1, bc1, wc2, bc2,
            wmu, bmu, wls, bls)


def prepare_params(raw):
    (w1, b1, w2, b2, w3, b3, wlat, blat, wc1, bc1, wc2, bc2,
     wmu, bmu, wls, bls) = raw
    return {
        "w1": w1, "b1": b1, "w2": w2, "b2": b2, "w3": w3, "b3": b3,
        "wlat": wlat, "blat": blat, "wc1": wc1, "bc1": bc1,
        "wc2": wc2, "bc2": bc2,
        # fused mu / log_std head (column-wise concat is numerically identical)
        "wmuls": jnp.concatenate([wmu, wls], axis=1),
        "bmuls": jnp.concatenate([bmu, bls], axis=1),
    }


def _reference_forward(state, u, eps, p, max_action):
    A = eps.shape[1]
    h = jax.nn.relu(state @ p["w1"] + p["b1"])
    h = jax.nn.relu(h @ p["w2"] + p["b2"])
    alpha = jax.nn.softmax(h @ p["w3"] + p["b3"], axis=1)
    gumbel = -jnp.log(-jnp.log(u + EPS) + EPS)
    y = jax.nn.softmax((jnp.log(alpha + EPS) + gumbel) * INV_TEMP, axis=1)
    one_hot = jax.nn.one_hot(jnp.argmax(alpha, axis=1), alpha.shape[1], dtype=alpha.dtype)
    z_disc = (one_hot - y) + y
    z = jax.nn.relu(z_disc @ p["wlat"] + p["blat"])
    a = jax.nn.relu(jnp.concatenate([state, z], axis=1) @ p["wc1"] + p["bc1"])
    a = jax.nn.relu(a @ p["wc2"] + p["bc2"])
    ml = a @ p["wmuls"] + p["bmuls"]
    mu = max_action * jnp.tanh(ml[:, :A])
    log_std = max_action * jnp.tanh(ml[:, A:])
    log_std = LOG_STD_LOW + 0.5 * (LOG_STD_HIGH - LOG_STD_LOW) * (jnp.tanh(log_std) + 1.0)
    return mu, log_std, mu + jnp.exp(log_std) * eps


if __name__ == "__main__":
    batch = 8
    state_dim = 16
    action_dim = 4
    hidden = (32, 32)
    component_num = 4
    max_action = 1.0

    root = jax.random.PRNGKey(0)
    k_param, k_state, k_unif, k_norm = jax.random.split(root, 4)

    raw = init_params(k_param, state_dim, action_dim, hidden, component_num)
    p = prepare_params(raw)
    slab, layout = pack_params(p)

    state = jax.random.normal(k_state, (batch, state_dim), jnp.float32)
    u = jax.random.uniform(k_unif, (batch, component_num), jnp.float32)   # gumbel uniforms
    eps = jax.random.normal(k_norm, (batch, action_dim), jnp.float32)     # rsample noise

    mu, log_std, action = gaussian_mixture_actor_forward(
        state, u, eps, slab, layout, max_action)
    jax.block_until_ready((mu, log_std, action))

    mu_r, ls_r, act_r = _reference_forward(state, u, eps, p, max_action)
    assert jnp.allclose(mu, mu_r, atol=1e-5), "mu mismatch"
    assert jnp.allclose(log_std, ls_r, atol=1e-5), "log_std mismatch"
    assert jnp.allclose(action, act_r, atol=1e-5), "action mismatch"

    print("KERNEL_OK")
</pallas_src>

<mosaic_0001>
module attributes {stable_mosaic.version = 11 : i64} {
  func.func @_gma_kernel(%arg0: i32, %arg1: memref<8x16xf32, #tpu.memory_space<vmem>>, %arg2: memref<8x4xf32, #tpu.memory_space<vmem>>, %arg3: memref<8x4xf32, #tpu.memory_space<vmem>>, %arg4: memref<240x128xf32, #tpu.memory_space<vmem>>, %arg5: memref<8x128xf32, #tpu.memory_space<vmem>>) attributes {dimension_semantics = [#tpu.dimension_semantics<parallel>], iteration_bounds = array<i64: 1>, scalar_prefetch = 0 : i64, scratch_operands = 0 : i64, tpu.core_type = #tpu.core_type<tc>, window_params = [{transform_indices = @transform_0, window_bounds = array<i64: 8, 16>}, {transform_indices = @transform_1, window_bounds = array<i64: 8, 4>}, {transform_indices = @transform_2, window_bounds = array<i64: 8, 4>}, {pipeline_mode = #tpu.pipeline_mode<synchronous>, transform_indices = @transform_3, window_bounds = array<i64: 240, 128>}, {transform_indices = @transform_4, window_bounds = array<i64: 8, 128>}]} {
    %c0 = arith.constant 0 : index
    %c0_0 = arith.constant 0 : index
    %0 = vector.load %arg1[%c0, %c0_0] : memref<8x16xf32, #tpu.memory_space<vmem>>, vector<8x16xf32>
    %c0_1 = arith.constant 0 : index
    %c0_2 = arith.constant 0 : index
    %1 = vector.load %arg4[%c0_1, %c0_2] : memref<240x128xf32, #tpu.memory_space<vmem>>, vector<16x32xf32>
    %cst = arith.constant dense<0.000000e+00> : vector<8x32xf32>
    %2 = tpu.matmul %0, %1, %cst {dimension_numbers = #tpu.dot_dimension_numbers<[1], [0], [0], [1], [0, 0, 1, 1], [], []>} : vector<8x16xf32>, vector<16x32xf32>, vector<8x32xf32> -> vector<8x32xf32>
    %c16 = arith.constant 16 : index
    %c0_3 = arith.constant 0 : index
    %3 = vector.load %arg4[%c16, %c0_3] : memref<240x128xf32, #tpu.memory_space<vmem>>, vector<1x32xf32>
    %4 = vector.broadcast %3 : vector<1x32xf32> to vector<8x32xf32>
    %5 = arith.addf %2, %4 : vector<8x32xf32>
    %cst_4 = arith.constant 0.000000e+00 : f32
    %6 = vector.broadcast %cst_4 : f32 to vector<8x32xf32>
    %7 = arith.maximumf %5, %6 : vector<8x32xf32>
    %c24 = arith.constant 24 : index
    %c0_5 = arith.constant 0 : index
    %8 = vector.load %arg4[%c24, %c0_5] : memref<240x128xf32, #tpu.memory_space<vmem>>, vector<32x32xf32>
    %cst_6 = arith.constant dense<0.000000e+00> : vector<8x32xf32>
    %9 = tpu.matmul %7, %8, %cst_6 {dimension_numbers = #tpu.dot_dimension_numbers<[1], [0], [0], [1], [0, 0, 1, 1], [], []>} : vector<8x32xf32>, vector<32x32xf32>, vector<8x32xf32> -> vector<8x32xf32>
    %c56 = arith.constant 56 : index
    %c0_7 = arith.constant 0 : index
    %10 = vector.load %arg4[%c56, %c0_7] : memref<240x128xf32, #tpu.memory_space<vmem>>, vector<1x32xf32>
    %11 = vector.broadcast %10 : vector<1x32xf32> to vector<8x32xf32>
    %12 = arith.addf %9, %11 : vector<8x32xf32>
    %cst_8 = arith.constant 0.000000e+00 : f32
    %13 = vector.broadcast %cst_8 : f32 to vector<8x32xf32>
    %14 = arith.maximumf %12, %13 : vector<8x32xf32>
    %c64 = arith.constant 64 : index
    %c0_9 = arith.constant 0 : index
    %15 = vector.load %arg4[%c64, %c0_9] : memref<240x128xf32, #tpu.memory_space<vmem>>, vector<32x4xf32>
    %cst_10 = arith.constant dense<0.000000e+00> : vector<8x4xf32>
    %16 = tpu.matmul %14, %15, %cst_10 {dimension_numbers = #tpu.dot_dimension_numbers<[1], [0], [0], [1], [0, 0, 1, 1], [], []>} : vector<8x32xf32>, vector<32x4xf32>, vector<8x4xf32> -> vector<8x4xf32>
    %c96 = arith.constant 96 : index
    %c0_11 = arith.constant 0 : index
    %17 = vector.load %arg4[%c96, %c0_11] : memref<240x128xf32, #tpu.memory_space<vmem>>, vector<1x4xf32>
    %18 = vector.broadcast %17 : vector<1x4xf32> to vector<8x4xf32>
    %19 = arith.addf %16, %18 : vector<8x4xf32>
    %cst_12 = arith.constant dense<0xFF800000> : vector<8xf32>
    %20 = vector.multi_reduction <maximumf>, %19, %cst_12 [1] : vector<8x4xf32> to vector<8xf32>
    %21 = vector.shape_cast %20 : vector<8xf32> to vector<8x1xf32>
    %22 = vector.broadcast %21 : vector<8x1xf32> to vector<8x4xf32>
    %23 = arith.subf %19, %22 : vector<8x4xf32>
    %24 = math.exp %23 : vector<8x4xf32>
    %cst_13 = arith.constant dense<0.000000e+00> : vector<8xf32>
    %25 = vector.multi_reduction <add>, %24, %cst_13 [1] : vector<8x4xf32> to vector<8xf32>
    %26 = vector.shape_cast %25 : vector<8xf32> to vector<8x1xf32>
    %27 = tpu.reciprocal %26 : vector<8x1xf32> -> vector<8x1xf32>
    %28 = vector.broadcast %27 : vector<8x1xf32> to vector<8x4xf32>
    %29 = arith.mulf %24, %28 : vector<8x4xf32>
    %c0_14 = arith.constant 0 : index
    %c0_15 = arith.constant 0 : index
    %30 = vector.load %arg2[%c0_14, %c0_15] : memref<8x4xf32, #tpu.memory_space<vmem>>, vector<8x4xf32>
    %cst_16 = arith.constant 9.99999996E-13 : f32
    %31 = vector.broadcast %cst_16 : f32 to vector<8x4xf32>
    %32 = arith.addf %30, %31 : vector<8x4xf32>
    %33 = math.log %32 : vector<8x4xf32>
    %cst_17 = arith.constant 0.000000e+00 : f32
    %34 = vector.broadcast %cst_17 : f32 to vector<8x4xf32>
    %35 = arith.subf %34, %33 : vector<8x4xf32>
    %cst_18 = arith.constant 9.99999996E-13 : f32
    %36 = vector.broadcast %cst_18 : f32 to vector<8x4xf32>
    %37 = arith.addf %35, %36 : vector<8x4xf32>
    %38 = math.log %37 : vector<8x4xf32>
    %cst_19 = arith.constant 0.000000e+00 : f32
    %39 = vector.broadcast %cst_19 : f32 to vector<8x4xf32>
    %40 = arith.subf %39, %38 : vector<8x4xf32>
    %cst_20 = arith.constant 9.99999996E-13 : f32
    %41 = vector.broadcast %cst_20 : f32 to vector<8x4xf32>
    %42 = arith.addf %29, %41 : vector<8x4xf32>
    %43 = math.log %42 : vector<8x4xf32>
    %44 = arith.addf %43, %40 : vector<8x4xf32>
    %cst_21 = arith.constant 1.49253726 : f32
    %45 = vector.broadcast %cst_21 : f32 to vector<8x4xf32>
    %46 = arith.mulf %44, %45 : vector<8x4xf32>
    %cst_22 = arith.constant dense<0xFF800000> : vector<8xf32>
    %47 = vector.multi_reduction <maximumf>, %46, %cst_22 [1] : vector<8x4xf32> to vector<8xf32>
    %48 = vector.shape_cast %47 : vector<8xf32> to vector<8x1xf32>
    %49 = vector.broadcast %48 : vector<8x1xf32> to vector<8x4xf32>
    %50 = arith.subf %46, %49 : vector<8x4xf32>
    %51 = math.exp %50 : vector<8x4xf32>
    %cst_23 = arith.constant dense<0.000000e+00> : vector<8xf32>
    %52 = vector.multi_reduction <add>, %51, %cst_23 [1] : vector<8x4xf32> to vector<8xf32>
    %53 = vector.shape_cast %52 : vector<8xf32> to vector<8x1xf32>
    %54 = tpu.reciprocal %53 : vector<8x1xf32> -> vector<8x1xf32>
    %55 = vector.broadcast %54 : vector<8x1xf32> to vector<8x4xf32>
    %56 = arith.mulf %51, %55 : vector<8x4xf32>
    %cst_24 = arith.constant dense<0xFF800000> : vector<8xf32>
    %57 = vector.multi_reduction <maximumf>, %29, %cst_24 [1] : vector<8x4xf32> to vector<8xf32>
    %58 = vector.shape_cast %57 : vector<8xf32> to vector<8x1xf32>
    %59 = tpu.iota {dimensions = array<i32: 1>} : vector<8x4xi32>
    %60 = vector.broadcast %58 : vector<8x1xf32> to vector<8x4xf32>
    %61 = arith.cmpf oeq, %29, %60 : vector<8x4xf32>
    %c4_i32 = arith.constant 4 : i32
    %62 = vector.broadcast %c4_i32 : i32 to vector<8x4xi32>
    %63 = arith.select %61, %59, %62 : vector<8x4xi1>, vector<8x4xi32>
    %cst_25 = arith.constant dense<2147483647> : vector<8xi32>
    %64 = vector.multi_reduction <minsi>, %63, %cst_25 [1] : vector<8x4xi32> to vector<8xi32>
    %65 = vector.shape_cast %64 : vector<8xi32> to vector<8x1xi32>
    %66 = vector.broadcast %65 : vector<8x1xi32> to vector<8x4xi32>
    %67 = arith.cmpi eq, %59, %66 : vector<8x4xi32>
    %68 = arith.extui %67 : vector<8x4xi1> to vector<8x4xi32>
    %69 = arith.sitofp %68 : vector<8x4xi32> to vector<8x4xf32>
    %70 = arith.subf %69, %56 : vector<8x4xf32>
    %71 = arith.addf %70, %56 : vector<8x4xf32>
    %c104 = arith.constant 104 : index
    %c0_26 = arith.constant 0 : index
    %72 = vector.load %arg4[%c104, %c0_26] : memref<240x128xf32, #tpu.memory_space<vmem>>, vector<4x16xf32>
    %cst_27 = arith.constant dense<0.000000e+00> : vector<8x16xf32>
    %73 = tpu.matmul %71, %72, %cst_27 {dimension_numbers = #tpu.dot_dimension_numbers<[1], [0], [0], [1], [0, 0, 1, 1], [], []>} : vector<8x4xf32>, vector<4x16xf32>, vector<8x16xf32> -> vector<8x16xf32>
    %c112 = arith.constant 112 : index
    %c0_28 = arith.constant 0 : index
    %74 = vector.load %arg4[%c112, %c0_28] : memref<240x128xf32, #tpu.memory_space<vmem>>, vector<1x16xf32>
    %75 = vector.broadcast %74 : vector<1x16xf32> to vector<8x16xf32>
    %76 = arith.addf %73, %75 : vector<8x16xf32>
    %cst_29 = arith.constant 0.000000e+00 : f32
    %77 = vector.broadcast %cst_29 : f32 to vector<8x16xf32>
    %78 = arith.maximumf %76, %77 : vector<8x16xf32>
    %79 = tpu.concatenate %0, %78 in 1 : vector<8x16xf32>, vector<8x16xf32> -> vector<8x32xf32>
    %c120 = arith.constant 120 : index
    %c0_30 = arith.constant 0 : index
    %80 = vector.load %arg4[%c120, %c0_30] : memref<240x128xf32, #tpu.memory_space<vmem>>, vector<32x32xf32>
    %cst_31 = arith.constant dense<0.000000e+00> : vector<8x32xf32>
    %81 = tpu.matmul %79, %80, %cst_31 {dimension_numbers = #tpu.dot_dimension_numbers<[1], [0], [0], [1], [0, 0, 1, 1], [], []>} : vector<8x32xf32>, vector<32x32xf32>, vector<8x32xf32> -> vector<8x32xf32>
    %c152 = arith.constant 152 : index
    %c0_32 = arith.constant 0 : index
    %82 = vector.load %arg4[%c152, %c0_32] : memref<240x128xf32, #tpu.memory_space<vmem>>, vector<1x32xf32>
    %83 = vector.broadcast %82 : vector<1x32xf32> to vector<8x32xf32>
    %84 = arith.addf %81, %83 : vector<8x32xf32>
    %cst_33 = arith.constant 0.000000e+00 : f32
    %85 = vector.broadcast %cst_33 : f32 to vector<8x32xf32>
    %86 = arith.maximumf %84, %85 : vector<8x32xf32>
    %c160 = arith.constant 160 : index
    %c0_34 = arith.constant 0 : index
    %87 = vector.load %arg4[%c160, %c0_34] : memref<240x128xf32, #tpu.memory_space<vmem>>, vector<32x32xf32>
    %cst_35 = arith.constant dense<0.000000e+00> : vector<8x32xf32>
    %88 = tpu.matmul %86, %87, %cst_35 {dimension_numbers = #tpu.dot_dimension_numbers<[1], [0], [0], [1], [0, 0, 1, 1], [], []>} : vector<8x32xf32>, vector<32x32xf32>, vector<8x32xf32> -> vector<8x32xf32>
    %c192 = arith.constant 192 : index
    %c0_36 = arith.constant 0 : index
    %89 = vector.load %arg4[%c192, %c0_36] : memref<240x128xf32, #tpu.memory_space<vmem>>, vector<1x32xf32>
    %90 = vector.broadcast %89 : vector<1x32xf32> to vector<8x32xf32>
    %91 = arith.addf %88, %90 : vector<8x32xf32>
    %cst_37 = arith.constant 0.000000e+00 : f32
    %92 = vector.broadcast %cst_37 : f32 to vector<8x32xf32>
    %93 = arith.maximumf %91, %92 : vector<8x32xf32>
    %c200 = arith.constant 200 : index
    %c0_38 = arith.constant 0 : index
    %94 = vector.load %arg4[%c200, %c0_38] : memref<240x128xf32, #tpu.memory_space<vmem>>, vector<32x8xf32>
    %cst_39 = arith.constant dense<0.000000e+00> : vector<8x8xf32>
    %95 = tpu.matmul %93, %94, %cst_39 {dimension_numbers = #tpu.dot_dimension_numbers<[1], [0], [0], [1], [0, 0, 1, 1], [], []>} : vector<8x32xf32>, vector<32x8xf32>, vector<8x8xf32> -> vector<8x8xf32>
    %c232 = arith.constant 232 : index
    %c0_40 = arith.constant 0 : index
    %96 = vector.load %arg4[%c232, %c0_40] : memref<240x128xf32, #tpu.memory_space<vmem>>, vector<1x8xf32>
    %97 = vector.broadcast %96 : vector<1x8xf32> to vector<8x8xf32>
    %98 = arith.addf %95, %97 : vector<8x8xf32>
    %99 = vector.extract_strided_slice %98 {offsets = [0, 0], sizes = [8, 4], strides = [1, 1]} : vector<8x8xf32> to vector<8x4xf32>
    %100 = math.tanh %99 : vector<8x4xf32>
    %cst_41 = arith.constant 1.000000e+00 : f32
    %101 = vector.broadcast %cst_41 : f32 to vector<8x4xf32>
    %102 = arith.mulf %101, %100 : vector<8x4xf32>
    %103 = vector.extract_strided_slice %98 {offsets = [0, 4], sizes = [8, 4], strides = [1, 1]} : vector<8x8xf32> to vector<8x4xf32>
    %104 = math.tanh %103 : vector<8x4xf32>
    %cst_42 = arith.constant 1.000000e+00 : f32
    %105 = vector.broadcast %cst_42 : f32 to vector<8x4xf32>
    %106 = arith.mulf %105, %104 : vector<8x4xf32>
    %107 = math.tanh %106 : vector<8x4xf32>
    %cst_43 = arith.constant 1.000000e+00 : f32
    %108 = vector.broadcast %cst_43 : f32 to vector<8x4xf32>
    %109 = arith.addf %107, %108 : vector<8x4xf32>
    %cst_44 = arith.constant 2.500000e+00 : f32
    %110 = vector.broadcast %cst_44 : f32 to vector<8x4xf32>
    %111 = arith.mulf %110, %109 : vector<8x4xf32>
    %cst_45 = arith.constant -5.000000e+00 : f32
    %112 = vector.broadcast %cst_45 : f32 to vector<8x4xf32>
    %113 = arith.addf %112, %111 : vector<8x4xf32>
    %114 = math.exp %113 : vector<8x4xf32>
    %c0_46 = arith.constant 0 : index
    %c0_47 = arith.constant 0 : index
    %115 = vector.load %arg3[%c0_46, %c0_47] : memref<8x4xf32, #tpu.memory_space<vmem>>, vector<8x4xf32>
    %116 = arith.mulf %114, %115 : vector<8x4xf32>
    %117 = arith.addf %102, %116 : vector<8x4xf32>
    %118 = tpu.concatenate %102, %113, %117 in 1 : vector<8x4xf32>, vector<8x4xf32>, vector<8x4xf32> -> vector<8x12xf32>
    %cst_48 = arith.constant 0.000000e+00 : f32
    %119 = vector.broadcast %cst_48 : f32 to vector<8x116xf32>
    %120 = tpu.concatenate %118, %119 in 1 : vector<8x12xf32>, vector<8x116xf32> -> vector<8x128xf32>
    %c0_49 = arith.constant 0 : index
    %c0_50 = arith.constant 0 : index
    %121 = vector.load %arg5[%c0_49, %c0_50] : memref<8x128xf32, #tpu.memory_space<vmem>>, vector<8x128xf32>
    tpu.vector_store %arg5[%c0_49, %c0_50], %120 {strides = array<i32>} : memref<8x128xf32, #tpu.memory_space<vmem>>, vector<8x128xf32>,
    return
  }
  func.func @transform_0(%arg0: i32) -> (i32, i32) {
    %c0_i32 = arith.constant 0 : i32
    %c0_i32_0 = arith.constant 0 : i32
    return %arg0, %c0_i32 : i32, i32
  }
  func.func @transform_1(%arg0: i32) -> (i32, i32) {
    %c0_i32 = arith.constant 0 : i32
    %c0_i32_0 = arith.constant 0 : i32
    return %arg0, %c0_i32 : i32, i32
  }
  func.func @transform_2(%arg0: i32) -> (i32, i32) {
    %c0_i32 = arith.constant 0 : i32
    %c0_i32_0 = arith.constant 0 : i32
    return %arg0, %c0_i32 : i32, i32
  }
  func.func @transform_3(%arg0: i32) -> (i32, i32) {
    %c0_i32 = arith.constant 0 : i32
    %c0_i32_0 = arith.constant 0 : i32
    %c0_i32_1 = arith.constant 0 : i32
    return %c0_i32, %c0_i32_0 : i32, i32
  }
  func.func @transform_4(%arg0: i32) -> (i32, i32) {
    %c0_i32 = arith.constant 0 : i32
    %c0_i32_0 = arith.constant 0 : i32
    return %arg0, %c0_i32 : i32, i32
  }
}

</mosaic_0001>

<bundles_post_ra>
// kernel: tpu_custom_call.1
= control target key start
LH: loop header
LB: loop body
LE: loop exit
PB: predicated region body
PF: predicated region fallthrough
CT: control target
= control target key end

     0   :  { %9 = vsyncpa [#allocation3], 0  ;;  %s1019_s0 = inlined_call_operand.vmem [shape: f32[8,16], index: 0, kind: input, shape index: {}]   ;;  %s1020_s1 = inlined_call_operand.vmem [shape: f32[8,4], index: 1, kind: input, shape index: {}]   ;;  %s1021_s2 = inlined_call_operand.vmem [shape: f32[8,4], index: 2, kind: input, shape index: {}]   ;;  %s1022_s3 = inlined_call_operand.hbm [shape: f32[240,128], index: 3, kind: input, shape index: {}]   ;;  %s1023_s4 = inlined_call_operand.hbm [shape: f32[8,128], index: 4, kind: output, shape index: {}]  }
   0x1   :  { %10 = vsyncpa [#allocation4], 0  ;;  %s911_s15 = smov [#allocation2]  }
   0x2   :  { %s22_s16 = sshll.u32 %s911_s15, 4  ;;  %s23_s16 = int_to_ptr.vmem [resolvable:$true] %s22_s16 }
   0x3   :  { %s875_s17 = scalar_lea.vmem %s23_s16, 3840  ;;  %p880_p1 = scmp.lt.s32.totalorder %s23_s16, %s23_s16 }
   0x4   :  { %p876_p0 = scmp.ne.s32.totalorder %s23_s16, %s875_s17  ;;  %p881_p2 = scmp.lt.s32.totalorder %s875_s17, %s875_s17 }
   0x6   :  { %p882_p3 = por %p881_p2, %p880_p1 }
   0x8   :  { %p883_p4 = pnand %p882_p3, %p876_p0 }
   0xa   :  { %886 = shalt.err (!%p883_p4)
}
   0xb   :  { %s912_s18 = smov 128   ;;  %s913_s19 = smov 8  }
   0xc   :  { %28 = dma.hbm_to_vmem [thread:$0]  %s1022_s3, 3840, %s23_s16, [#allocation3], %s912_s18, %s912_s18, %s913_s19  }
   0xd   :  { %907 = dma.done.wait [#allocation3], 3840  }
   0xe   :  { %908 = vsyncadd [#allocation3], 4294963456  ;;  %v914_v0 = vmov 0.0   ;;  %vm915_vm0 = vmmov 0   ;;  %v34_v1 = vld [vmem:[#allocation2 + $0x8] sm:$0xff]  ;;  %v33_v2 = vld [vmem:[#allocation2] sm:$0xff]  ;;  %v321_v51 = vlaneseq }
   0xf   :  { %771 = vmatprep.subr.mxu1 %v914_v0  ;;  %775 = vmatprep.mubr.msk.f32.mxu1 %vm915_vm0, %v914_v0  ;;  %v958_v3 = vld [vmem:[%s1019_s0] sm:$0xff]  ;;  %vm40_vm1 = vcmask 130048   ;;  %v118_v4 = vld [vmem:[#allocation2 + $0x30] sm:$0xff]  ;;  %v117_v5 = vld [vmem:[#allocation2 + $0x28] sm:$0xff]  ;;  %vm124_vm2 = vcmask 261120   ;;  %vm281_vm3 = vcmask 31744  }
  0x10   :  { %789 = vmatprep.subr.mxu0 %v914_v0  ;;  %797 = vmatprep.mubr.msk.f32.mxu0 %vm915_vm0, %v914_v0  ;;  %v116_v6 = vld [vmem:[#allocation2 + $0x20] sm:$0xff]  ;;  %v115_v7 = vld [vmem:[#allocation2 + $0x18] sm:$0xff]  ;;  %v725_v9 = vld [vmem:[#allocation2 + $0x10] ss:$0 sm:$0xff]  ;;  %v322_v52 = vand.u32 127, %v321_v51  ;;  %vm354_vm6 = vcmask 1043456  }
  0x11   :  { %772 = vmatpush3.msra.mxu1 %v34_v1  ;;  %v202_v8 = vld [vmem:[#allocation2 + $0x58] sm:$0xff]  ;;  %v201_v14 = vld [vmem:[#allocation2 + $0x50] sm:$0xff]  ;;  %v200_v15 = vld [vmem:[#allocation2 + $0x48] sm:$0xff]  ;;  %s917_s26 = smov 4   ;;  %vm705_vm8 = vcmask 64512   ;;  %s919_s27 = smov [#allocation5]  }
  0x12   :  { %773 = vmatprep.subr.mxu1 %v914_v0  ;;  %790 = vmatpush3.msra.mxu0 %v202_v8  ;;  %v199_v16 = vld [vmem:[#allocation2 + $0x40] sm:$0xff]  ;;  %v727_v17 = vld [vmem:[#allocation2 + $0x38] ss:$0 sm:$0xff]  ;;  %s716_s28 = sshll.u32 %s919_s27, 4  ;;  %vm707_vm9 = vcmask 97280   ;;  %s717_s28 = int_to_ptr.vmem [resolvable:$true] %s716_s28 }
  0x13   :  { %774 = vmatpush3.msra.mxu1 %v33_v2  ;;  %791 = vmatprep.subr.mxu0 %v914_v0  ;;  %v729_v22 = vld [vmem:[#allocation2 + $0x60] ss:$0 sm:$0xff]  ;;  %s887_s29 = scalar_lea.vmem %s717_s28, 128  ;;  %p892_p6 = scmp.lt.s32.totalorder %s717_s28, %s717_s28 }
  0x14   :  { %776 = vmatmul.mubr.msk.f32.vlgmr.msra.gmra.mxu1 %vm40_vm1, %v958_v3  ;;  %778 = vmatprep.subr.mxu1 %v914_v0  ;;  %v293_v32 = vld [vmem:[%s1020_s1] sm:$0xff]  ;;  %s916_s1 = smov 16   ;;  %p888_p5 = scmp.ne.s32.totalorder %s717_s28, %s887_s29 }
  0x15   :  { %779 = vmatpush3.msra.mxu1 %v118_v4  ;;  %786 = vmatprep.mubr.msk.f32.mxu1 %vm915_vm0, %v914_v0  ;;  %v294_v33 = vadd.f32 1e-12, %v293_v32  ;;  %v603_v32 = vld [vmem:[#allocation2 + $0xe0] sm:$0xff]  ;;  %p893_p7 = scmp.lt.s32.totalorder %s887_s29, %s887_s29 }
  0x16   :  { %780 = vmatprep.subr.mxu1 %v914_v0  ;;  %792 = vmatpush3.msra.mxu0 %v201_v14 }
  0x17   :  { %781 = vmatpush3.msra.mxu1 %v117_v5  ;;  %793 = vmatprep.subr.mxu0 %v914_v0  ;;  %v345_v5 = vld [vmem:[#allocation2 + $0x68] sm:$0xf]  ;;  %p894_p8 = por %p893_p7, %p892_p6 }
  0x18   :  { %782 = vmatprep.subr.mxu1 %v914_v0  ;;  %794 = vmatpush3.msra.mxu0 %v200_v15 }
  0x19   :  { %783 = vmatpush3.msra.mxu1 %v116_v6  ;;  %795 = vmatprep.subr.mxu0 %v914_v0  ;;  %p895_p9 = pnand %p894_p8, %p888_p5 }
  0x1a   :  { %784 = vmatprep.subr.mxu1 %v914_v0  ;;  %796 = vmatpush3.msra.mxu0 %v199_v16 }
  0x1b   :  { %785 = vmatpush3.msra.mxu1 %v115_v7  ;;  %805 = vmatprep.subr.mxu0 %v914_v0 }
  0x1c   :  { %800 = vmatprep.subr.mxu1 %v914_v0 }
  0xd4   :  { %v110_v10 = vpop.f32.mrf.mxu1 }
  0xd5   :  { %v111_v11 = vadd.f32 %v725_v9, %v110_v10 }
  0xd6   :  { %v777_v12 = vpop.f32.mrf.mxu1 }
  0xd7   :  { %v114_v13 = vmax.f32 %v111_v11, 0.0 }
  0xd9   :  { %787 = vmatmul.mubr.msk.f32.vlgmr.msra.gmra.mxu1 %vm124_vm2, %v114_v13 }
  0xda   :  { %802 = vmatprep.mubr.msk.f32.mxu1 %vm915_vm0, %v914_v0  ;;  %801 = vmatpush3.msk.msra.mxu1 %vm354_vm6, %v345_v5 }
  0xdb   :  { %816 = vmatprep.subr.mxu1 %v914_v0 }
 0x199   :  { %v194_v18 = vpop.f32.mrf.mxu1 }
 0x19a   :  { %v195_v19 = vadd.f32 %v727_v17, %v194_v18  ;;  %v437_v17 = vld [vmem:[#allocation2 + $0x90] sm:$0xff]  ;;  %v436_v18 = vld [vmem:[#allocation2 + $0x88] sm:$0xff] }
 0x19b   :  { %v788_v20 = vpop.f32.mrf.mxu1 }
 0x19c   :  { %v198_v21 = vmax.f32 %v195_v19, 0.0  ;;  %v435_v19 = vld [vmem:[#allocation2 + $0x80] sm:$0xff]  ;;  %v434_v20 = vld [vmem:[#allocation2 + $0x78] sm:$0xff] }
 0x19e   :  { %798 = vmatmul.mubr.msk.f32.vlgmr.msra.gmra.mxu0 %vm124_vm2, %v198_v21  ;;  %v520_v21 = vld [vmem:[#allocation2 + $0xb8] sm:$0xff] }
 0x19f   :  { %813 = vmatprep.mubr.msk.f32.mxu0 %vm915_vm0, %v914_v0  ;;  %806 = vmatpush3.msra.mxu0 %v437_v17 }
 0x1a0   :  { %807 = vmatprep.subr.mxu0 %v914_v0 }
 0x1a1   :  { %808 = vmatpush3.msra.mxu0 %v436_v18 }
 0x1a2   :  { %809 = vmatprep.subr.mxu0 %v914_v0 }
 0x1a3   :  { %810 = vmatpush3.msra.mxu0 %v435_v19 }
 0x1a4   :  { %811 = vmatprep.subr.mxu0 %v914_v0 }
 0x1a5   :  { %812 = vmatpush3.msra.mxu0 %v434_v20 }
 0x1a6   :  { %827 = vmatprep.subr.mxu0 %v914_v0 }
 0x25e   :  { %v277_v23 = vpop.f32.mrf.mxu0 }
 0x25f   :  { %v278_v24 = vadd.f32 %v729_v22, %v277_v23  ;;  %v732_v22 = vld [vmem:[#allocation2 + $0x70] ss:$0 sm:$0xff] }
 0x260   :  { %v799_v25 = vpop.f32.mrf.mxu0 }
 0x261   :  { %v282_v26 = vsel %vm281_vm3, %v278_v24, -inf }
 0x262   :  { %283 = vmax.xlane.f32.xlu0 %v282_v26 }
 0x2eb   :  { %v284_v27 = vpop.xlane.xlu0 %283 }
 0x2ec   :  { %v285_v28 = vsub.f32 %v278_v24, %v284_v27 }
 0x2ee   :  { %v286_v29 = vmul.f32 1.442695, %v285_v28 }
 0x2f0   :  { %847 = vpow2.f32 %v286_v29  ;;  %v519_v29 = vld [vmem:[#allocation2 + $0xb0] sm:$0xff] }
 0x2f1   :  { %849 = vlog2.f32 %v294_v33 }
 0x2fd   :  { %v848_v30 = vpop.eup %847 }
 0x2fe   :  { %v288_v31 = vsel %vm281_vm3, %v848_v30, 0.0  ;;  %v850_v34 = vpop.eup %849 }
 0x2ff   :  { %289 = vadd.xlane.f32.xlu0 %v288_v31  ;;  %v296_v35 = vmul.f32 0.6931472, %v850_v34  ;;  %v517_v31 = vld [vmem:[#allocation2 + $0xa0] sm:$0xff] }
 0x301   :  { %v297_v37 = vsub.f32 0.0, %v296_v35 }
 0x303   :  { %v298_v38 = vadd.f32 1e-12, %v297_v37  ;;  %v602_v37 = vld [vmem:[#allocation2 + $0xd8] sm:$0xff] }
 0x388   :  { %v290_v36 = vpop.xlane.xlu0 %289 }
 0x389   :  { %851 = vrcp.f32 %v290_v36 }
 0x38a   :  { %853 = vlog2.f32 %v298_v38  ;;  %v601_v38 = vld [vmem:[#allocation2 + $0xd0] sm:$0xff] }
 0x396   :  { %v852_v39 = vpop.eup %851 }
 0x397   :  { %v292_v40 = vmul.f32 %v852_v39, %v848_v30  ;;  %v854_v43 = vpop.eup %853  ;;  %v518_v30 = vld [vmem:[#allocation2 + $0xa8] sm:$0xff] }
 0x398   :  { %v300_v44 = vmul.f32 0.6931472, %v854_v43  ;;  %v600_v39 = vld [vmem:[#allocation2 + $0xc8] sm:$0xff] }
 0x399   :  { %v318_v41 = vsel %vm281_vm3, %v292_v40, -inf  ;;  %v302_v42 = vadd.f32 1e-12, %v292_v40 }
 0x39a   :  { %319 = vmax.xlane.f32.xlu1 %v318_v41  ;;  %v301_v45 = vsub.f32 0.0, %v300_v44  ;;  %v737_v41 = vld [vmem:[#allocation2 + $0xc0] ss:$0 sm:$0xff] }
 0x39b   :  { %855 = vlog2.f32 %v302_v42 }
 0x3a8   :  { %v856_v46 = vpop.eup %855 }
 0x3a9   :  { %v304_v47 = vmul.f32 0.6931472, %v856_v46  ;;  %v739_v46 = vld [vmem:[#allocation2 + $0xe8] ss:$0 sm:$0xff] }
 0x3ab   :  { %v305_v48 = vadd.f32 %v304_v47, %v301_v45 }
 0x3ad   :  { %v306_v49 = vmul.f32 1.4925373, %v305_v48 }
 0x3af   :  { %v307_v50 = vsel %vm281_vm3, %v306_v49, -inf }
 0x3b0   :  { %308 = vmax.xlane.f32.xlu1 %v307_v50 }
 0x423   :  { %v320_v53 = vpop.xlane.xlu1 %319 }
 0x424   :  { %vm323_vm4 = vcmp.eq.f32.partialorder %v292_v40, %v320_v53  ;;  %v689_v40 = vld [vmem:[%s1021_s2] sm:$0xff]  ;;  %s918_s2 = smov 124  }
 0x425   :  { %v324_v54 = vsel %vm323_vm4, %v322_v52, 4 }
 0x426   :  { %v325_v55 = vsel %vm281_vm3, %v324_v54, 2147483647 }
 0x427   :  { %v327_v56 = vshra.s32 %v325_v55, 16  ;;  %v326_v63 = vand.u32 65535, %v325_v55 }
 0x429   :  { %v329_v57 = vcvt.s32.f32 %v327_v56  ;;  %v328_v2 = vcvt.s32.f32 %v326_v63 }
 0x42b   :  { %330 = vmin.xlane.f32.xlu0 %v329_v57 }
 0x439   :  { %v309_v58 = vpop.xlane.xlu1 %308 }
 0x43a   :  { %v310_v59 = vsub.f32 %v306_v49, %v309_v58 }
 0x43c   :  { %v311_v60 = vmul.f32 1.442695, %v310_v59 }
 0x43e   :  { %857 = vpow2.f32 %v311_v60 }
 0x44b   :  { %v858_v61 = vpop.eup %857 }
 0x44c   :  { %v313_v62 = vsel %vm281_vm3, %v858_v61, 0.0 }
 0x44d   :  { %314 = vadd.xlane.f32.xlu1 %v313_v62 }
 0x4b4   :  { %v331_v1 = vpop.xlane.xlu0 %330 }
 0x4b5   :  { %vm332_vm5 = vcmp.eq.f32.partialorder %v329_v57, %v331_v1  ;;  %v337_v7 = vcvt.f32.s32 %v331_v1 }
 0x4b6   :  { %v333_v4 = vsel %vm332_vm5, %v328_v2, inf }
 0x4b7   :  { %334 = vmin.xlane.f32.xlu0 %v333_v4  ;;  %v338_v9 = vshll.u32 %v337_v7, 16 }
 0x4cd   :  { %691 = vrot.lane.b32.xlu0 %v689_v40, %s917_s26 }
 0x4d6   :  { %v315_v6 = vpop.xlane.xlu1 %314 }
 0x4d7   :  { %859 = vrcp.f32 %v315_v6 }
 0x4e4   :  { %v860_v11 = vpop.eup %859 }
 0x4e5   :  { %v317_v13 = vmul.f32 %v860_v11, %v858_v61 }
 0x540   :  { %v335_v8 = vpop.xlane.xlu0 %334 }
 0x541   :  { %v336_v10 = vcvt.f32.s32 %v335_v8 }
 0x543   :  { %v339_v12 = vadd.s32 %v338_v9, %v336_v10 }
 0x544   :  { %v692_v55 = vpop.permute.xlu0 %691 }
 0x545   :  { %vm340_vm7 = vcmp.eq.s32.totalorder %v322_v52, %v339_v12 }
 0x546   :  { %v731_v14 = vsel %vm340_vm7, 1.0, %v914_v0 }
 0x547   :  { %v343_v15 = vsub.f32 %v731_v14, %v317_v13 }
 0x549   :  { %v344_v16 = vadd.f32 %v343_v15, %v317_v13 }
 0x54b   :  { %803 = vmatmul.mubr.msk.f32.vlgmr.msra.gmra.mxu1 %vm281_vm3, %v344_v16 }
 0x54c   :  { %824 = vmatprep.mubr.msk.f32.mxu1 %vm915_vm0, %v914_v0  ;;  %817 = vmatpush3.msra.mxu1 %v520_v21 }
 0x54d   :  { %818 = vmatprep.subr.mxu1 %v914_v0 }
 0x54e   :  { %819 = vmatpush3.msra.mxu1 %v519_v29 }
 0x54f   :  { %820 = vmatprep.subr.mxu1 %v914_v0 }
 0x550   :  { %821 = vmatpush3.msra.mxu1 %v518_v30 }
 0x551   :  { %822 = vmatprep.subr.mxu1 %v914_v0 }
 0x552   :  { %823 = vmatpush3.msra.mxu1 %v517_v31 }
 0x60b   :  { %v424_v23 = vpop.f32.mrf.mxu1 }
 0x60c   :  { %v425_v24 = vadd.f32 %v732_v22, %v424_v23 }
 0x60d   :  { %v804_v25 = vpop.f32.mrf.mxu1 }
 0x60e   :  { %v428_v26 = vmax.f32 %v425_v24, 0.0 }
 0x610   :  { %430 = vrot.lane.b32.xlu1 %v428_v26, %s916_s1 }
 0x682   :  { %v431_v27 = vpop.permute.xlu1 %430 }
 0x683   :  { %v433_v28 = vsel %vm40_vm1, %v958_v3, %v431_v27  ;;  %v735_v3 = vld [vmem:[#allocation2 + $0x98] ss:$0 sm:$0xff] }
 0x684   :  { %814 = vmatmul.mubr.msk.f32.vlgmr.msra.gmra.mxu0 %vm124_vm2, %v433_v28 }
 0x685   :  { %835 = vmatprep.mubr.msk.f32.mxu0 %vm915_vm0, %v914_v0  ;;  %828 = vmatpush3.msra.mxu0 %v603_v32 }
 0x686   :  { %829 = vmatprep.subr.mxu0 %v914_v0 }
 0x687   :  { %830 = vmatpush3.msra.mxu0 %v602_v37 }
 0x688   :  { %831 = vmatprep.subr.mxu0 %v914_v0 }
 0x689   :  { %832 = vmatpush3.msra.mxu0 %v601_v38 }
 0x68a   :  { %833 = vmatprep.subr.mxu0 %v914_v0 }
 0x68b   :  { %834 = vmatpush3.msra.mxu0 %v600_v39 }
 0x744   :  { %v512_v33 = vpop.f32.mrf.mxu0 }
 0x745   :  { %v513_v34 = vadd.f32 %v735_v3, %v512_v33 }
 0x746   :  { %v815_v35 = vpop.f32.mrf.mxu0 }
 0x747   :  { %v516_v36 = vmax.f32 %v513_v34, 0.0 }
 0x749   :  { %825 = vmatmul.mubr.msk.f32.vlgmr.msra.gmra.mxu1 %vm124_vm2, %v516_v36 }
 0x809   :  { %v595_v42 = vpop.f32.mrf.mxu1 }
 0x80a   :  { %v596_v43 = vadd.f32 %v737_v41, %v595_v42 }
 0x80b   :  { %v826_v44 = vpop.f32.mrf.mxu1 }
 0x80c   :  { %v599_v45 = vmax.f32 %v596_v43, 0.0 }
 0x80e   :  { %836 = vmatmul.mubr.msk.f32.vlgmr.msra.gmra.mxu0 %vm124_vm2, %v599_v45 }
 0x8ce   :  { %v678_v47 = vpop.f32.mrf.mxu0 }
 0x8cf   :  { %v679_v48 = vadd.f32 %v739_v46, %v678_v47 }
 0x8d0   :  { %v837_v49 = vpop.f32.mrf.mxu0 }
 0x8d1   :  { %861 = vtanh.f32 %v679_v48 }
 0x8de   :  { %v862_v0 = vpop.eup %861 }
 0x8df   :  { %863 = vtanh.f32 %v862_v0 }
 0x8ec   :  { %v864_v50 = vpop.eup %863 }
 0x8ed   :  { %v684_v51 = vadd.f32 1.0, %v864_v50 }
 0x8ef   :  { %v685_v52 = vmul.f32 2.5, %v684_v51 }
 0x8f1   :  { %v686_v53 = vadd.f32 -5.0, %v685_v52 }
 0x8f3   :  { %v687_v54 = vmul.f32 1.442695, %v686_v53  ;;  %v704_v60 = vsel %vm281_vm3, %v862_v0, %v686_v53 }
 0x8f5   :  { %865 = vpow2.f32 %v687_v54 }
 0x902   :  { %v866_v56 = vpop.eup %865 }
 0x903   :  { %v694_v57 = vmul.f32 %v866_v56, %v692_v55 }
 0x905   :  { %696 = vrot.lane.b32.xlu1 %v694_v57, %s918_s2 }
 0x977   :  { %v697_v58 = vpop.permute.xlu1 %696 }
 0x978   :  { %v699_v59 = vadd.f32 %v862_v0, %v697_v58 }
 0x97a   :  { %701 = vrot.lane.b32.xlu1 %v699_v59, %s913_s19 }
 0x9ec   :  { %v702_v61 = vpop.permute.xlu1 %701 }
 0x9ed   :  { %v706_v62 = vsel %vm705_vm8, %v704_v60, %v702_v61 }
 0x9ee   :  { %v708_v63 = vsel %vm707_vm9, %v706_v62, 0.0 }
 0x9ef   :  { %709 = vst [vmem:[#allocation5] sm:$0xff] %v708_v63 }
 0x9f0   :  { %898 = shalt.err (!%p895_p9)
}
 0x9f1   :  { %719 = dma.vmem_to_hbm [thread:$0]  %s717_s28, 128, %s1023_s4, [#allocation4]  }
 0x9f2   :  { %909 = dma.done.wait [#allocation4], 128  }
 0x9f3   :  { %910 = vsyncadd [#allocation4], 4294967168 }
 0x9f4   :  { %723 = vsyncpa [#allocation3], 1 }
 0x9f5   :  { %724 = vsyncpa [#allocation4], 1 }

</bundles_post_ra>
